<compile_context>
chip_gen: v7x
topology: tpu7x:2x2x1
jax: 0.10.0
libtpu: 0.0.40
codegen_flags: <defaults>
</compile_context>

<pallas_src>
import functools
import math

import jax
import jax.numpy as jnp
from jax.experimental import pallas as pl
from jax.experimental.pallas import tpu as pltpu

# ----- synthetic config (small stand-ins for cfg.MODEL.*) -----
S3_DIM = 32      # cfg.MODEL.S3_DIM   (real: 1024)
S4_DIM = 64      # cfg.MODEL.S4_DIM   (real: 2048)
GEM_EPS = 1e-6   # GeneralizedMeanPoolingP clamp eps


def _dolg_head_kernel(f4_ref, w_ref, b_ref, out_ref, acc_ref, *, p, hw, thw):
    """Fused GeM pooling (pool_g) + fc_t linear.

    Grid = (batch tiles [parallel], HW tiles [arbitrary, trailing reduction]).

    f4_ref : VMEM [TB, THW, C4]  -- stage-4 features, NHWC-flattened (C4 on lanes)
    w_ref  : VMEM [C4, S3]       -- fc_t weight (transposed vs torch), resident
    b_ref  : VMEM [1, S3]        -- fc_t bias, resident
    out_ref: VMEM [TB, S3]
    acc_ref: VMEM f32 [TB, C4]   -- running sum of clamp(x, eps)^p over HW
    """
    k = pl.program_id(1)

    @pl.when(k == 0)
    def _init():
        acc_ref[...] = jnp.zeros_like(acc_ref)

    x = f4_ref[...].astype(jnp.float32)            # (TB, THW, C4), f32 math
    x = jnp.maximum(x, GEM_EPS)                    # clamp(min=eps)

    if p == 3.0:
        # Static specialization: cube via 2 VPU multiplies instead of exp/log (EUP).
        xp = (x * x) * x
    else:
        xp = jnp.exp(jnp.float32(p) * jnp.log(x))  # general x**p (x > 0)

    if hw % thw != 0:
        # Mask padded spatial rows of the last (partial) HW tile to exactly 0.
        base = k * thw
        sp = jax.lax.broadcasted_iota(jnp.int32, xp.shape, dimension=1)
        xp = jnp.where(base + sp < hw, xp, 0.0)

    # Spatial reduction over the sublane (second-to-last) axis: plain VPU adds.
    acc_ref[...] += jnp.sum(xp, axis=1)

    @pl.when(k == pl.num_programs(1) - 1)
    def _finalize():
        # gem = (sum / HW) ** (1/p) = exp((log(sum) - log(HW)) * (1/p))
        # Transcendentals only on the small (TB, C4) pooled tensor.
        inv_p = jnp.float32(1.0 / p)
        gem = jnp.exp((jnp.log(acc_ref[...]) - jnp.float32(math.log(hw))) * inv_p)
        # fc_t: (TB, C4) @ (C4, S3) + b  -> single MXU matmul per batch tile.
        fg = jnp.dot(gem, w_ref[...].astype(jnp.float32),
                     preferred_element_type=jnp.float32)
        out_ref[...] = (fg + b_ref[...].astype(jnp.float32)).astype(out_ref.dtype)


def dolg_head(f4_nhwc, w_t, b_t, p, *, tb=None, thw=None, out_dtype=jnp.float32):
    """f4_nhwc: (B, H, W, C4) (NHWC so C4 lands on lanes) -> fg: (B, S3)."""
    B, Hs, Ws, C4 = f4_nhwc.shape
    HW = Hs * Ws
    S3 = w_t.shape[1]
    f4_flat = f4_nhwc.reshape(B, HW, C4)
    b2 = b_t.reshape(1, S3)
    itemsize = f4_flat.dtype.itemsize

    # ---- tile sizes ----
    # Batch tile: full B when small, else a multiple of 8 (f32 sublane / output rows).
    if tb is None:
        tb = B if B <= 8 else 8
    # HW tile: full HW when it fits, else the largest multiple of 8 keeping the
    # double-buffered f4 stream under ~16 MiB (leaves headroom for the resident
    # fc_t weight + accumulator on every chip generation, incl. v7x 64 MiB VMEM).
    if thw is None:
        stream_budget = 16 * 2**20
        thw = max(8, (stream_budget // (2 * tb * C4 * itemsize)) // 8 * 8)
        if thw >= HW:
            thw = HW

    grid = (pl.cdiv(B, tb), pl.cdiv(HW, thw))

    # ---- explicit VMEM budget: 2x double-buffered f4 tile + resident weight ----
    vmem_need = (2 * tb * thw * C4 * itemsize           # double-buffered f4 stream
                 + C4 * S3 * w_t.dtype.itemsize          # resident weight
                 + S3 * b_t.dtype.itemsize               # resident bias
                 + 2 * tb * S3 * 4                       # double-buffered output
                 + tb * C4 * 4)                          # GeM accumulator
    vmem_limit = int(min(max(int(vmem_need * 1.25) + (2 << 20), 16 * 2**20),
                         40 * 2**20))

    cost = pl.CostEstimate(
        flops=2 * B * C4 * S3 + 4 * B * HW * C4,
        transcendentals=2 * B * C4
        + (0 if float(p) == 3.0 else 2 * B * HW * C4),
        bytes_accessed=f4_flat.size * itemsize
        + w_t.size * w_t.dtype.itemsize
        + b2.size * b_t.dtype.itemsize
        + B * S3 * jnp.dtype(out_dtype).itemsize,
    )

    kernel = functools.partial(_dolg_head_kernel, p=float(p), hw=HW, thw=thw)

    return pl.pallas_call(
        kernel,
        out_shape=jax.ShapeDtypeStruct((B, S3), out_dtype),
        grid_spec=pltpu.PrefetchScalarGridSpec(
            num_scalar_prefetch=0,
            grid=grid,
            in_specs=[
                pl.BlockSpec((tb, thw, C4), lambda i, k: (i, k, 0)),  # f4 tile
                pl.BlockSpec((C4, S3), lambda i, k: (0, 0)),          # weight, resident
                pl.BlockSpec((1, S3), lambda i, k: (0, 0)),           # bias, resident
            ],
            out_specs=pl.BlockSpec((tb, S3), lambda i, k: (i, 0)),
            scratch_shapes=[pltpu.VMEM((tb, C4), jnp.float32)],       # GeM accumulator
        ),
        compiler_params=pltpu.CompilerParams(
            dimension_semantics=("parallel", "arbitrary"),
            vmem_limit_bytes=vmem_limit,
        ),
        cost_estimate=cost,
    )(f4_flat, w_t, b2)


def standin_backbone(x, w_proj4):
    # TODO(synk): ResNet source for self.globalmodel was not provided; this is a
    # deterministic avg-pool + 1x1-projection stand-in that only reproduces shapes.
    # It emits NHWC directly so the head kernel gets C4 on the lane dim w/o transpose.
    B, C, H, W = x.shape
    x4 = x.reshape(B, C, H // 4, 4, W // 4, 4).mean(axis=(3, 5))    # stride-4 downsample
    f4 = jnp.einsum("bchw,cd->bhwd", x4, w_proj4)                   # (B, H/4, W/4, S4_DIM)
    f3 = None  # f3 is unused by the active DOLG.forward
    return f3, f4


def _ref_head(f4_nhwc, w, b, p):
    pooled = jnp.mean(jnp.maximum(f4_nhwc, GEM_EPS) ** p, axis=(1, 2)) ** (1.0 / p)
    return pooled @ w + b


if __name__ == "__main__":
    key = jax.random.PRNGKey(0)
    k1, k2, k3, k4 = jax.random.split(key, 4)

    B, C_IN, H, W = 2, 4, 16, 16
    x = jax.random.normal(k1, (B, C_IN, H, W), jnp.float32)

    # Deterministic parameter init (shapes from the module's __init__).
    w_proj4 = jax.random.normal(k2, (C_IN, S4_DIM), jnp.float32) * 0.1
    # fc_t = nn.Linear(S4_DIM, S3_DIM): torch weight is (S3, S4); we keep it transposed.
    w_t = jax.random.normal(k3, (S4_DIM, S3_DIM), jnp.float32) / jnp.sqrt(
        jnp.float32(S4_DIM)
    )
    b_t = jax.random.normal(k4, (S3_DIM,), jnp.float32) * 0.01
    p_gem = 3.0  # GeneralizedMeanPoolingP(norm=3.0)

    # Forward (f32 path; thw=8 forces 2 HW-reduction grid steps to exercise the
    # accumulator init/finalize pattern even at toy shapes).
    _, f4 = standin_backbone(x, w_proj4)                  # (B, 4, 4, S4_DIM) NHWC
    fg = jax.block_until_ready(dolg_head(f4, w_t, b_t, p_gem, thw=8))

    ref = _ref_head(f4, w_t, b_t, p_gem)
    assert fg.shape == (B, S3_DIM)
    assert jnp.allclose(fg, ref, atol=1e-4, rtol=1e-4), "Pallas f32 result mismatch"

    # bf16 f4 stream (production path: halves HBM bytes / VMEM tile footprint);
    # the kernel upcasts and accumulates in f32.
    f4_bf16 = f4.astype(jnp.bfloat16)
    fg_bf = jax.block_until_ready(dolg_head(f4_bf16, w_t, b_t, p_gem))
    ref_bf = _ref_head(f4_bf16.astype(jnp.float32), w_t, b_t, p_gem)
    assert jnp.allclose(fg_bf, ref_bf, atol=1e-3, rtol=1e-3), "Pallas bf16 result mismatch"

    print("KERNEL_OK")
</pallas_src>

<mosaic_0001>
module attributes {stable_mosaic.version = 11 : i64} {
  func.func @_dolg_head_kernel(%arg0: i32, %arg1: i32, %arg2: memref<2x8x64xf32, #tpu.memory_space<vmem>>, %arg3: memref<64x32xf32, #tpu.memory_space<vmem>>, %arg4: memref<1x32xf32, #tpu.memory_space<vmem>>, %arg5: memref<2x32xf32, #tpu.memory_space<vmem>>, %arg6: memref<2x64xf32, #tpu.memory_space<vmem>>) attributes {dimension_semantics = [#tpu.dimension_semantics<parallel>, #tpu.dimension_semantics<arbitrary>], iteration_bounds = array<i64: 1, 2>, scalar_prefetch = 0 : i64, scratch_operands = 1 : i64, tpu.core_type = #tpu.core_type<tc>, window_params = [{transform_indices = @transform_0, window_bounds = array<i64: 2, 8, 64>}, {pipeline_mode = #tpu.pipeline_mode<synchronous>, transform_indices = @transform_1, window_bounds = array<i64: 64, 32>}, {pipeline_mode = #tpu.pipeline_mode<synchronous>, transform_indices = @transform_2, window_bounds = array<i64: 1, 32>}, {transform_indices = @transform_3, window_bounds = array<i64: 2, 32>}]} {
    %c0_i32 = arith.constant 0 : i32
    %0 = arith.cmpi eq, %arg1, %c0_i32 : i32
    %1 = arith.extui %0 : i1 to i32
    %c0_i32_0 = arith.constant 0 : i32
    %2 = arith.cmpi ne, %1, %c0_i32_0 : i32
    scf.if %2 {
      %cst_9 = arith.constant 0.000000e+00 : f32
      %15 = vector.broadcast %cst_9 : f32 to vector<2x64xf32>
      %c0_10 = arith.constant 0 : index
      %c0_11 = arith.constant 0 : index
      %16 = vector.load %arg6[%c0_10, %c0_11] : memref<2x64xf32, #tpu.memory_space<vmem>>, vector<2x64xf32>
      tpu.vector_store %arg6[%c0_10, %c0_11], %15 {strides = array<i32>} : memref<2x64xf32, #tpu.memory_space<vmem>>, vector<2x64xf32>,
    } else {
    }
    %c0 = arith.constant 0 : index
    %c0_1 = arith.constant 0 : index
    %c0_2 = arith.constant 0 : index
    %3 = vector.load %arg2[%c0, %c0_1, %c0_2] : memref<2x8x64xf32, #tpu.memory_space<vmem>>, vector<2x8x64xf32>
    %cst = arith.constant 9.99999997E-7 : f32
    %4 = vector.broadcast %cst : f32 to vector<2x8x64xf32>
    %5 = arith.maximumf %3, %4 : vector<2x8x64xf32>
    %6 = arith.mulf %5, %5 : vector<2x8x64xf32>
    %7 = arith.mulf %6, %5 : vector<2x8x64xf32>
    %c0_3 = arith.constant 0 : index
    %c0_4 = arith.constant 0 : index
    %8 = vector.load %arg6[%c0_3, %c0_4] : memref<2x64xf32, #tpu.memory_space<vmem>>, vector<2x64xf32>
    %cst_5 = arith.constant dense<0.000000e+00> : vector<2x64xf32>
    %9 = vector.multi_reduction <add>, %7, %cst_5 [1] : vector<2x8x64xf32> to vector<2x64xf32>
    %10 = arith.addf %8, %9 : vector<2x64xf32>
    %c0_6 = arith.constant 0 : index
    %c0_7 = arith.constant 0 : index
    %11 = vector.load %arg6[%c0_6, %c0_7] : memref<2x64xf32, #tpu.memory_space<vmem>>, vector<2x64xf32>
    tpu.vector_store %arg6[%c0_6, %c0_7], %10 {strides = array<i32>} : memref<2x64xf32, #tpu.memory_space<vmem>>, vector<2x64xf32>,
    %c1_i32 = arith.constant 1 : i32
    %12 = arith.cmpi eq, %arg1, %c1_i32 : i32
    %13 = arith.extui %12 : i1 to i32
    %c0_i32_8 = arith.constant 0 : i32
    %14 = arith.cmpi ne, %13, %c0_i32_8 : i32
    scf.if %14 {
      %c0_9 = arith.constant 0 : index
      %c0_10 = arith.constant 0 : index
      %15 = vector.load %arg6[%c0_9, %c0_10] : memref<2x64xf32, #tpu.memory_space<vmem>>, vector<2x64xf32>
      %16 = math.log %15 : vector<2x64xf32>
      %cst_11 = arith.constant 2.77258873 : f32
      %17 = vector.broadcast %cst_11 : f32 to vector<2x64xf32>
      %18 = arith.subf %16, %17 : vector<2x64xf32>
      %cst_12 = arith.constant 0.333333343 : f32
      %19 = vector.broadcast %cst_12 : f32 to vector<2x64xf32>
      %20 = arith.mulf %18, %19 : vector<2x64xf32>
      %21 = math.exp %20 : vector<2x64xf32>
      %c0_13 = arith.constant 0 : index
      %c0_14 = arith.constant 0 : index
      %22 = vector.load %arg3[%c0_13, %c0_14] : memref<64x32xf32, #tpu.memory_space<vmem>>, vector<64x32xf32>
      %cst_15 = arith.constant dense<0.000000e+00> : vector<2x32xf32>
      %23 = tpu.matmul %21, %22, %cst_15 {dimension_numbers = #tpu.dot_dimension_numbers<[1], [0], [0], [1], [0, 0, 1, 1], [], []>} : vector<2x64xf32>, vector<64x32xf32>, vector<2x32xf32> -> vector<2x32xf32>
      %c0_16 = arith.constant 0 : index
      %c0_17 = arith.constant 0 : index
      %24 = vector.load %arg4[%c0_16, %c0_17] : memref<1x32xf32, #tpu.memory_space<vmem>>, vector<1x32xf32>
      %25 = vector.broadcast %24 : vector<1x32xf32> to vector<2x32xf32>
      %26 = arith.addf %23, %25 : vector<2x32xf32>
      %c0_18 = arith.constant 0 : index
      %c0_19 = arith.constant 0 : index
      %27 = vector.load %arg5[%c0_18, %c0_19] : memref<2x32xf32, #tpu.memory_space<vmem>>, vector<2x32xf32>
      tpu.vector_store %arg5[%c0_18, %c0_19], %26 {strides = array<i32>} : memref<2x32xf32, #tpu.memory_space<vmem>>, vector<2x32xf32>,
    } else {
    }
    return
  }
  func.func @transform_0(%arg0: i32, %arg1: i32) -> (i32, i32, i32) {
    %c0_i32 = arith.constant 0 : i32
    %c0_i32_0 = arith.constant 0 : i32
    return %arg0, %arg1, %c0_i32 : i32, i32, i32
  }
  func.func @transform_1(%arg0: i32, %arg1: i32) -> (i32, i32) {
    %c0_i32 = arith.constant 0 : i32
    %c0_i32_0 = arith.constant 0 : i32
    %c0_i32_1 = arith.constant 0 : i32
    return %c0_i32, %c0_i32_0 : i32, i32
  }
  func.func @transform_2(%arg0: i32, %arg1: i32) -> (i32, i32) {
    %c0_i32 = arith.constant 0 : i32
    %c0_i32_0 = arith.constant 0 : i32
    %c0_i32_1 = arith.constant 0 : i32
    return %c0_i32, %c0_i32_0 : i32, i32
  }
  func.func @transform_3(%arg0: i32, %arg1: i32) -> (i32, i32) {
    %c0_i32 = arith.constant 0 : i32
    %c0_i32_0 = arith.constant 0 : i32
    return %arg0, %c0_i32 : i32, i32
  }
}

</mosaic_0001>

<bundles_post_ra>
// kernel: tpu_custom_call.1
= control target key start
LH: loop header
LB: loop body
LE: loop exit
PB: predicated region body
PF: predicated region fallthrough
CT: control target
= control target key end

     0   :  { %8 = vsyncpa [#allocation5], 0  ;;  %s630_s12 = smov 0   ;;  %s632_s13 = smov 0   ;;  %s752_s0 = inlined_call_operand.vmem [shape: f32[2,16,64], index: 0, kind: input, shape index: {}]   ;;  %s753_s1 = inlined_call_operand.vmem [shape: f32[64,32], index: 1, kind: input, shape index: {}]   ;;  %s754_s2 = inlined_call_operand.vmem [shape: f32[1,32], index: 2, kind: input, shape index: {}]   ;;  %s755_s3 = inlined_call_operand.hbm [shape: f32[2,32], index: 3, kind: output, shape index: {}]  }
   0x1   :  { %s634_s14 = smov 0   ;;  %s636_s15 = smov 0  }
   0x2   :  { %s638_s16 = smov 0  }
   0x3 LB: > { %s424_s17 = sadd.s32 4294967295, %s603_s16   ;;  %s23_s18 = sadd.s32 1, %s599_s15  ;;  %s603_s16 = sphi %s638_s16, %s14_s16   ;;  %s599_s15 = sphi %s636_s15, %s760_s15   ;;  %s595_s14 = sphi %s634_s14, %s759_s14   ;;  %s591_s13 = sphi %s632_s13, %s758_s13   ;;  %s587_s12 = sphi %s630_s12, %s757_s12  }
   0x4   : > { %p24_p0 = scmp.ge.s32.totalorder %s23_s18, 2  ;;  %p42_p1 = scmp.ne.s32.totalorder %s591_s13, %s587_s12 }
   0x5   : > { %p43_p2 = scmp.eq.s32.totalorder %s603_s16, 0  ;;  %s35_s20 = sadd.s32 1, %s591_s13 }
   0x6   : > { %s762_s18 = smov (%p24_p0, %s23_s18), 0  ;;  %p426_p5 = scmp.ge.s32.totalorder %s603_s16, 2 }
   0x7   : > { %p44_p3 = por %p43_p2, %p42_p1  ;;  %s31_s19 = ssub.s32 %s599_s15, %s762_s18 }
   0x8   : > { %p33_p4 = scmp.eq.s32.totalorder %s31_s19, 0  ;;  %142 = sbr.rel (%p426_p5) target bundleno = 22 (0x16), region = 24 }
   0xa   : > { %s666_s21 = scalar_select %p33_p4, %s591_s13, %s35_s20  }
   0xf   : > { %145 = sbr.rel (!%p44_p3) target bundleno = 22 (0x16), region = 28  ;;  %s147_s22 = sand.u32 (%p44_p3), 1, %s591_s13  }
  0x10   : > { %s428_s23 = sshll.u32 (%p44_p3), %s599_s15, 3  ;;  %s427_s24 = sshll.u32 (%p44_p3), %s147_s22, 4 }
  0x11   : > { %s154_s27 = scalar_lea.vmem (%p44_p3), %s752_s0, %s428_s23  ;;  %s149_s28 = scalar_lea.vmem (%p44_p3), [#allocation3], %s427_s24 }
  0x12   : > { %v184_v0 = vld [vmem:[%s154_s27] sm:$0xff] (%p44_p3)  ;;  %v186_v1 = vld [vmem:[%s154_s27 + $0x10] sm:$0xff] (%p44_p3) }
  0x13   : > { %185 = vst [vmem:[%s149_s28] sm:$0xff] (%p44_p3), %v184_v0  ;;  %187 = vst [vmem:[%s149_s28 + $0x8] sm:$0xff] (%p44_p3), %v186_v1 }
  0x16 PF: > { %p429_p6 = scmp.ge.s32.totalorder %s603_s16, 1  ;;  %p192_p7 = scmp.lt.s32.totalorder %s603_s16, 3 }
  0x18   : > { %p193_p8 = pnand %p429_p6, %p192_p7 }
  0x19   : > { %s199_s29 = sand.u32 (!%p193_p8), 1, %s587_s12   ;;  %p431_p9 = scmp.ne.s32.totalorder (!%p193_p8), %s595_s14, 0 }
  0x1a   : > { %196 = sbr.rel (%p193_p8) target bundleno = 341 (0x155), region = 66  ;;  %s430_s30 = sshll.u32 (!%p193_p8), %s199_s29, 4 }
  0x1b   : > { %s201_s4 = scalar_lea.vmem (!%p193_p8), [#allocation3], %s430_s30 }
  0x21   : > { %221 = sbr.rel (%p431_p9) target bundleno = 40 (0x28), region = 74  ;;  %vm222_vm0 = vcmask (!%p431_p9), 517120   ;;  %v605_v2 = vmov (!%p431_p9), 0.0  }
  0x22   : > { %223 = vst.msk [vmem:[#allocation2] sm:$0x3] (!%p431_p9), %vm222_vm0, %v605_v2 }
  0x28 PF: > { %v224_v3 = vld [vmem:[%s201_s4] sm:$0xff]  ;;  %v225_v4 = vld [vmem:[%s201_s4 + $0x8] sm:$0xff]  ;;  %vm233_vm1 = vcmask 523264   ;;  %vm250_vm2 = vcmask 1041409   ;;  %vm254_vm3 = vcmask 517120   ;;  %p432_p10 = scmp.ne.s32.totalorder %s595_s14, 1 }
  0x29   : > { %v226_v5 = vmax.f32 %v224_v3, 1e-06  ;;  %v227_v6 = vmax.f32 %v225_v4, 1e-06  ;;  %v232_v23 = vld [vmem:[#allocation2] sm:$0x3] }
  0x2a   : > { %v267_v28 = vld [vmem:[%s753_s1] sm:$0xff] (!%p432_p10)  ;;  %v268_v29 = vld [vmem:[%s753_s1 + $0x8] sm:$0xff] (!%p432_p10)  ;;  %v269_v30 = vld [vmem:[%s753_s1 + $0x10] sm:$0xff] (!%p432_p10)  ;;  %v606_v31 = vmov (!%p432_p10), 0.0|0.0   ;;  %vm607_vm4 = vmmov (!%p432_p10), 0   ;;  %v608_v34 = vmov (!%p432_p10), 0.0  }
  0x2b   : > { %v228_v7 = vmul.f32 %v226_v5, %v226_v5  ;;  %v229_v8 = vmul.f32 %v227_v6, %v227_v6  ;;  %468 = vmatprep.subr.bf16.mxu0 (!%p432_p10), %v606_v31  ;;  %v469_v32 = vpack.c.bf16 (!%p432_p10), %v268_v29, %v267_v28  ;;  %v270_v33 = vld [vmem:[%s753_s1 + $0x18] sm:$0xff] (!%p432_p10)  ;;  %465 = vmatprep.mubr.msk.f32.mxu0 (!%p432_p10), %vm607_vm4, %v608_v34  ;;  %v271_v37 = vld [vmem:[%s753_s1 + $0x20] sm:$0xff] (!%p432_p10)  ;;  %v272_v38 = vld [vmem:[%s753_s1 + $0x28] sm:$0xff] (!%p432_p10)  ;;  %vm355_vm5 = vcmask (!%p432_p10), 254976  }
  0x2c   : > { %v472_v36 = vpack.c.bf16 (!%p432_p10), %v270_v33, %v269_v30  ;;  %v475_v39 = vpack.c.bf16 (!%p432_p10), %v272_v38, %v271_v37  ;;  %v273_v40 = vld [vmem:[%s753_s1 + $0x30] sm:$0xff] (!%p432_p10)  ;;  %v274_v41 = vld [vmem:[%s753_s1 + $0x38] sm:$0xff] (!%p432_p10)  ;;  %v434_v49 = vld [vmem:[%s754_s2] ss:$0 sm:$0xff] (!%p432_p10) }
  0x2d   : > { %v230_v9 = vmul.f32 %v228_v7, %v226_v5  ;;  %v231_v10 = vmul.f32 %v229_v8, %v227_v6  ;;  %470 = vmatpush3.bf16.msra.mxu0 (!%p432_p10), %v469_v32  ;;  %v478_v42 = vpack.c.bf16 (!%p432_p10), %v274_v41, %v273_v40 }
  0x2e   : > { %471 = vmatprep.subr.bf16.mxu0 (!%p432_p10), %v606_v31 }
  0x2f   : > { %v234_v11 = vsel %vm233_vm1, %v230_v9, 0.0  ;;  %v241_v12 = vsel %vm233_vm1, %v231_v10, 0.0 }
  0x30   : > { %v235_v13 = vrot.slane %v234_v11, 4  ;;  %v242_v14 = vrot.slane %v241_v12, 4 }
  0x31   : > { %473 = vmatpush3.bf16.msra.mxu0 (!%p432_p10), %v472_v36 }
  0x32   : > { %v236_v15 = vadd.f32 %v235_v13, %v234_v11  ;;  %v243_v16 = vadd.f32 %v242_v14, %v241_v12  ;;  %474 = vmatprep.subr.bf16.mxu0 (!%p432_p10), %v606_v31 }
  0x34   : > { %v237_v17 = vrot.slane %v236_v15, 2  ;;  %v244_v18 = vrot.slane %v243_v16, 2 }
  0x35   : > { %476 = vmatpush3.bf16.msra.mxu0 (!%p432_p10), %v475_v39 }
  0x36   : > { %v238_v19 = vadd.f32 %v237_v17, %v236_v15  ;;  %v245_v20 = vadd.f32 %v244_v18, %v243_v16  ;;  %477 = vmatprep.subr.bf16.mxu0 (!%p432_p10), %v606_v31 }
  0x38   : > { %v239_v21 = vrot.slane %v238_v19, 1  ;;  %v246_v22 = vrot.slane %v245_v20, 1 }
  0x39   : > { %259 = sbr.rel (%p432_p10) target bundleno = 316 (0x13c), region = 78  ;;  %479 = vmatpush3.bf16.msra.mxu0 (!%p432_p10), %v478_v42 }
  0x3a   : > { %v240_v24 = vadd.f32 %v239_v21, %v238_v19  ;;  %v247_v25 = vadd.f32 %v246_v22, %v245_v20 }
  0x3c   : > { %v251_v26 = vsel %vm250_vm2, %v247_v25, %v240_v24 }
  0x3d   : > { %v253_v27 = vadd.f32 %v251_v26, %v232_v23 }
  0x3f   : > { %255 = vst.msk [vmem:[#allocation2] sm:$0x3] %vm254_vm3, %v253_v27 }
  0x46   : > { %v260_v35 = vld [vmem:[#allocation2] sm:$0x3] }
  0x47   : > { %531 = vlog2.f32 %v260_v35 }
  0x51   : > { %v532_v43 = vpop.eup %531 }
  0x52   : > { %v262_v44 = vmul.f32 0.6931472, %v532_v43 }
  0x54   : > { %v433_v45 = vadd.f32 -2.7725887, %v262_v44 }
  0x56   : > { %v264_v46 = vmul.f32 0.33333334, %v433_v45 }
  0x58   : > { %v265_v47 = vmul.f32 1.442695, %v264_v46 }
  0x5a   : > { %533 = vpow2.f32 %v265_v47 }
  0x64   : > { %v534_v48 = vpop.eup %533 }
  0x65   : > { %466 = vmatmul.mubr.msk.f32.vlgmr.msra.gmra.mrb[0].mxu0 %vm233_vm1, %v534_v48 }
 0x138   : > { %v351_v50 = vpop.f32.mrb[0].mxu0 }
 0x139   : > { %v352_v51 = vadd.f32 %v434_v49, %v351_v50  ;;  %v467_v52 = vpop.f32.mrb[1].mxu0 }
 0x13b   : > { %356 = vst.msk [vmem:[#allocation4] sm:$0x3] %vm355_vm5, %v352_v51 }
 0x13c PF: > { %p711_p11 = scmp.eq.s32.totalorder %s424_s17, 1  ;;  %s609_s30 = smov [#allocation4]  }
 0x13d   : > { %s366_s4 = sshll.u32 %s609_s30, 4  ;;  %s367_s4 = int_to_ptr.vmem [resolvable:$true] %s366_s4 }
 0x13e   : > { %s535_s5 = scalar_lea.vmem %s367_s4, 32  ;;  %p542_p1 = scmp.lt.s32.totalorder %s367_s4, %s367_s4 }
 0x13f   : > { %p536_p12 = scmp.ne.s32.totalorder %s367_s4, %s535_s5  ;;  %p543_p2 = scmp.lt.s32.totalorder %s535_s5, %s535_s5 }
 0x141   : > { %p537_p13 = pnand %p536_p12, %p711_p11  ;;  %p544_p3 = por %p543_p2, %p542_p1 }
 0x143   : > { %p538_p0 = pneg %p537_p13 }
 0x145   : > { %p545_p4 = pnand %p544_p3, %p538_p0 }
 0x147   : > { %548 = shalt.err (!%p545_p4)
}
 0x148   : > { %s549_s17 = scalar_lea.hbm %s755_s3, 32 }
 0x149   : > { %p550_p5 = scmp.ne.s32.totalorder %s755_s3, %s549_s17  ;;  %p555_p8 = scmp.lt.u32.totalorder %s549_s17, %s755_s3 }
 0x14b   : > { %p551_p6 = pnand %p550_p5, %p711_p11 }
 0x14d   : > { %p552_p7 = pneg %p551_p6 }
 0x14f   : > { %p557_p9 = pnand %p555_p8, %p552_p7 }
 0x151   : > { %560 = shalt.err (!%p557_p9)
}
 0x152   : > { %481 = dma.vmem_to_hbm [thread:$0]  (%p711_p11), %s367_s4, 32, %s755_s3, [#allocation5]  }
 0x153   : > { %582 = dma.done.wait (%p711_p11), [#allocation5], 32  }
 0x154   : > { %584 = vsyncadd (%p711_p11), [#allocation5], 4294967264 }
 0x155 PF: > { %s14_s16 = sadd.s32 1, %s603_s16   ;;  %s757_s12 = smov %s591_s13 }
 0x156   : > { %p11_p10 = scmp.ge.s32.totalorder %s14_s16, 4   ;;  %s758_s13 = smov %s666_s21 }
 0x157   : > { %s759_s14 = smov %s599_s15  ;;  %s760_s15 = smov %s762_s18 }
 0x158   :  { %13 = sbr.rel (!%p11_p10) target bundleno = 3 (0x3), region = 111 }
 0x15f   :  { %379 = vsyncpa [#allocation5], 1 }
 0x160   :  { %381 = vsyncpa [#allocation5 + $0x1], 1 }

</bundles_post_ra>
